<compile_context>
chip_gen: v5e
topology: v5e:2x2
jax: 0.10.0
libtpu: 0.0.40
codegen_flags: <defaults>
</compile_context>

<pallas_src>
import functools

import jax
import jax.numpy as jnp
from jax.experimental import pallas as pl
from jax.experimental.pallas import tpu as pltpu


# --------------------------- chip heuristics ---------------------------------
def _device_kind():
    try:
        return jax.devices()[0].device_kind.lower()
    except Exception:
        return ""


def _default_compute_dtype():
    kind = _device_kind()
    # v6e / v7x have bf16 VPU+EUP (halved tanh cost) and native bf16 MXU rate.
    if "v6" in kind or "v7" in kind:
        return jnp.bfloat16
    # v5e: no bf16 VPU/EUP path -> keep activations f32 to avoid convert churn.
    return jnp.float32


def _tensorcores_per_chip():
    kind = _device_kind()
    if "v7" in kind or "v4" in kind or "v5p" in kind:
        return 2
    return 1


# ----------------------------- Pallas kernel --------------------------------
def _mlp_kernel(*refs, n_hidden_minus_1, n_chunks, compute_dtype):
    if n_hidden_minus_1 > 0:
        (x_ref, w_in_ref, b_in_ref, w_h_ref, b_h_ref,
         w_out_ref, b_out_ref, o_ref) = refs
    else:
        x_ref, w_in_ref, b_in_ref, w_out_ref, b_out_ref, o_ref = refs
        w_h_ref = b_h_ref = None

    cdt = compute_dtype
    in_dim, batch_tile = x_ref.shape
    sub = batch_tile // n_chunks

    w_in = w_in_ref[...]     # (N, in_dim) f32
    b_in = b_in_ref[...]     # (N, 1) f32

    def input_layer(xc):
        if in_dim <= 8:
            # K is tiny (e.g. 2): an MXU pass would be ~pure systolic fill latency.
            # Broadcasted VPU FMAs are essentially free in an EUP-bound kernel.
            z = b_in
            for k in range(in_dim):
                z = z + w_in[:, k:k + 1] * xc[k:k + 1, :]
        else:
            z = jnp.dot(w_in.astype(cdt), xc.astype(cdt),
                        preferred_element_type=jnp.float32) + b_in
        return jnp.tanh(z.astype(cdt))

    # Independent lane sub-chunks -> independent dependence chains, so one chunk's
    # tanh (EUP slot) overlaps the other chunk's matmul (MXU slot).
    hs = [input_layer(x_ref[:, c * sub:(c + 1) * sub]) for c in range(n_chunks)]

    # Hidden layers (static unroll; weight converted once per layer, reused by both chunks).
    for l in range(n_hidden_minus_1):
        w_l = w_h_ref[l].astype(cdt)
        b_l = b_h_ref[l]
        hs = [
            jnp.tanh(
                (jnp.dot(w_l, h, preferred_element_type=jnp.float32) + b_l).astype(cdt)
            )
            for h in hs
        ]

    # Output layer (no activation), f32 accumulation, lane-dense unmasked stores.
    w_o = w_out_ref[...].astype(cdt)
    b_o = b_out_ref[...]
    for c in range(n_chunks):
        out = jnp.dot(w_o, hs[c], preferred_element_type=jnp.float32) + b_o
        o_ref[:, c * sub:(c + 1) * sub] = out.astype(o_ref.dtype)


def mlp_forward(x, params, *, batch_tile=512, compute_dtype=None):
    """MLP forward pass with a Pallas kernel; batch on the lane axis, tiled over batch."""
    w_in, b_in, w_h, b_h, w_out, b_out = params
    B, in_dim = x.shape
    neurons = w_in.shape[0]
    out_dim = w_out.shape[0]
    n_h = w_h.shape[0]

    if compute_dtype is None:
        compute_dtype = _default_compute_dtype()

    # Lane-dense tiling: batch maps to lanes, so the tile must be a multiple of 128.
    lane = 128
    batch_tile = max(lane, (int(batch_tile) // lane) * lane)
    B_ceil = pl.cdiv(B, lane) * lane
    batch_tile = min(batch_tile, B_ceil)
    # v7x (2 TCs/chip): ensure the "parallel" batch axis has >= 2 grid steps so both
    # TensorCores get work. Skipped on single-TC chips (v5e/v6e).
    if _tensorcores_per_chip() >= 2 and B_ceil >= 2 * lane:
        batch_tile = min(batch_tile, max(lane, (B_ceil // 2 // lane) * lane))
    B_pad = pl.cdiv(B, batch_tile) * batch_tile

    # Two independent sub-chunks per tile (MXU/EUP overlap) once the tile is wide enough
    # for both sub-chunks to stay lane-dense (multiples of 128).
    n_chunks = 2 if batch_tile % 256 == 0 else 1

    # Pad batch up to the tile multiple, then transpose so batch is the minor (lane) axis.
    if B_pad != B:
        x = jnp.pad(x, ((0, B_pad - B), (0, 0)))
    x_t = x.T  # (in_dim, B_pad)

    kernel = functools.partial(
        _mlp_kernel,
        n_hidden_minus_1=n_h,
        n_chunks=n_chunks,
        compute_dtype=compute_dtype,
    )

    grid = (B_pad // batch_tile,)
    in_specs = [
        pl.BlockSpec((in_dim, batch_tile), lambda i: (0, i)),      # x^T (batch on lanes)
        pl.BlockSpec((neurons, in_dim), lambda i: (0, 0)),         # w_in  (out, in)
        pl.BlockSpec((neurons, 1), lambda i: (0, 0)),              # b_in  (out, 1)
    ]
    operands = [x_t, w_in, b_in]
    if n_h > 0:
        in_specs += [
            pl.BlockSpec((n_h, neurons, neurons), lambda i: (0, 0, 0)),  # stacked w_h
            pl.BlockSpec((n_h, neurons, 1), lambda i: (0, 0, 0)),        # stacked b_h
        ]
        operands += [w_h, b_h]
    in_specs += [
        pl.BlockSpec((out_dim, neurons), lambda i: (0, 0)),        # w_out (out, in)
        pl.BlockSpec((out_dim, 1), lambda i: (0, 0)),              # b_out (out, 1)
    ]
    operands += [w_out, b_out]
    out_specs = pl.BlockSpec((out_dim, batch_tile), lambda i: (0, i))

    y_t = pl.pallas_call(
        kernel,
        out_shape=jax.ShapeDtypeStruct((out_dim, B_pad), x.dtype),
        grid_spec=pltpu.PrefetchScalarGridSpec(
            num_scalar_prefetch=0,
            grid=grid,
            in_specs=in_specs,
            out_specs=out_specs,
        ),
        compiler_params=pltpu.CompilerParams(
            dimension_semantics=("parallel",),
        ),
    )(*operands)

    # Back to (batch, out_dim), dropping the batch padding.
    return y_t.T[:B]


# --------------------------- parameter init ----------------------------------
def xavier_uniform(key, fan_out, fan_in, gain):
    # PyTorch layout: weight shape (out_features, in_features).
    limit = gain * jnp.sqrt(6.0 / (fan_in + fan_out))
    return jax.random.uniform(key, (fan_out, fan_in), jnp.float32,
                              minval=-limit, maxval=limit)


def init_params(key, input_dimension, output_dimension, n_hidden_layers, neurons):
    gain = 5.0 / 3.0  # nn.init.calculate_gain('tanh')
    keys = jax.random.split(key, n_hidden_layers + 1)
    w_in = xavier_uniform(keys[0], neurons, input_dimension, gain)
    b_in = jnp.zeros((neurons, 1), jnp.float32)
    n_h = n_hidden_layers - 1
    if n_h > 0:
        w_h = jnp.stack([xavier_uniform(keys[1 + i], neurons, neurons, gain)
                         for i in range(n_h)], axis=0)
    else:
        w_h = jnp.zeros((0, neurons, neurons), jnp.float32)
    b_h = jnp.zeros((n_h, neurons, 1), jnp.float32)
    w_out = xavier_uniform(keys[-1], output_dimension, neurons, gain)
    b_out = jnp.zeros((output_dimension, 1), jnp.float32)
    return w_in, b_in, w_h, b_h, w_out, b_out


# --------------------------- pure-JAX reference -------------------------------
def mlp_reference(x, params):
    w_in, b_in, w_h, b_h, w_out, b_out = params
    h = jnp.tanh(x @ w_in.T + b_in[:, 0])
    for l in range(w_h.shape[0]):
        h = jnp.tanh(h @ w_h[l].T + b_h[l, :, 0])
    return h @ w_out.T + b_out[:, 0]


# ------------------------------------ main ------------------------------------
if __name__ == "__main__":
    # Module hyperparameters (consistent with the PINN-style usage of this class).
    input_dimension = 2
    output_dimension = 1
    n_hidden_layers = 4
    neurons = 32

    key = jax.random.PRNGKey(0)
    k_params, k_x1, k_x2 = jax.random.split(key, 3)

    params = init_params(k_params, input_dimension, output_dimension,
                         n_hidden_layers, neurons)

    cdt = _default_compute_dtype()
    # bf16 tanh/matmuls (v6e/v7x) are an intentional precision tradeoff vs the f32 reference.
    tol = 5e-2 if cdt == jnp.bfloat16 else 1e-5

    # Small demo batch (module-consistent shape): grid=1, single 128-lane tile.
    x_small = jax.random.normal(k_x1, (64, input_dimension), jnp.float32)
    y_small = jax.block_until_ready(mlp_forward(x_small, params, compute_dtype=cdt))
    assert y_small.shape == (64, output_dimension)
    if not jnp.allclose(y_small, mlp_reference(x_small, params), atol=tol, rtol=tol):
        raise AssertionError("Pallas kernel output mismatch vs reference (B=64)")

    # Larger batch exercising the 512-lane tile, multi-step grid and 2-sub-chunk path.
    x_big = jax.random.normal(k_x2, (1024, input_dimension), jnp.float32)
    y_big = jax.block_until_ready(mlp_forward(x_big, params, compute_dtype=cdt))
    assert y_big.shape == (1024, output_dimension)
    if not jnp.allclose(y_big, mlp_reference(x_big, params), atol=tol, rtol=tol):
        raise AssertionError("Pallas kernel output mismatch vs reference (B=1024)")

    print("KERNEL_OK")
</pallas_src>

<mosaic_0001>
module attributes {stable_mosaic.version = 11 : i64} {
  func.func @_mlp_kernel(%arg0: i32, %arg1: memref<2x128xf32, #tpu.memory_space<vmem>>, %arg2: memref<32x2xf32, #tpu.memory_space<vmem>>, %arg3: memref<32x1xf32, #tpu.memory_space<vmem>>, %arg4: memref<3x32x32xf32, #tpu.memory_space<vmem>>, %arg5: memref<3x32x1xf32, #tpu.memory_space<vmem>>, %arg6: memref<1x32xf32, #tpu.memory_space<vmem>>, %arg7: memref<1x1xf32, #tpu.memory_space<vmem>>, %arg8: memref<1x128xf32, #tpu.memory_space<vmem>>) attributes {dimension_semantics = [#tpu.dimension_semantics<parallel>], iteration_bounds = array<i64: 1>, scalar_prefetch = 0 : i64, scratch_operands = 0 : i64, tpu.core_type = #tpu.core_type<tc>, window_params = [{transform_indices = @transform_0, window_bounds = array<i64: 2, 128>}, {pipeline_mode = #tpu.pipeline_mode<synchronous>, transform_indices = @transform_1, window_bounds = array<i64: 32, 2>}, {pipeline_mode = #tpu.pipeline_mode<synchronous>, transform_indices = @transform_2, window_bounds = array<i64: 32, 1>}, {pipeline_mode = #tpu.pipeline_mode<synchronous>, transform_indices = @transform_3, window_bounds = array<i64: 3, 32, 32>}, {pipeline_mode = #tpu.pipeline_mode<synchronous>, transform_indices = @transform_4, window_bounds = array<i64: 3, 32, 1>}, {pipeline_mode = #tpu.pipeline_mode<synchronous>, transform_indices = @transform_5, window_bounds = array<i64: 1, 32>}, {pipeline_mode = #tpu.pipeline_mode<synchronous>, transform_indices = @transform_6, window_bounds = array<i64: 1, 1>}, {transform_indices = @transform_7, window_bounds = array<i64: 1, 128>}]} {
    %c0 = arith.constant 0 : index
    %c0_0 = arith.constant 0 : index
    %0 = vector.load %arg2[%c0, %c0_0] : memref<32x2xf32, #tpu.memory_space<vmem>>, vector<32x2xf32>
    %c0_1 = arith.constant 0 : index
    %c0_2 = arith.constant 0 : index
    %1 = vector.load %arg3[%c0_1, %c0_2] : memref<32x1xf32, #tpu.memory_space<vmem>>, vector<32x1xf32>
    %c0_3 = arith.constant 0 : index
    %c0_4 = arith.constant 0 : index
    %2 = vector.load %arg1[%c0_3, %c0_4] : memref<2x128xf32, #tpu.memory_space<vmem>>, vector<2x128xf32>
    %3 = vector.extract_strided_slice %0 {offsets = [0, 0], sizes = [32, 1], strides = [1, 1]} : vector<32x2xf32> to vector<32x1xf32>
    %4 = vector.extract_strided_slice %2 {offsets = [0, 0], sizes = [1, 128], strides = [1, 1]} : vector<2x128xf32> to vector<1x128xf32>
    %5 = vector.broadcast %3 : vector<32x1xf32> to vector<32x128xf32>
    %6 = vector.broadcast %4 : vector<1x128xf32> to vector<32x128xf32>
    %7 = arith.mulf %5, %6 : vector<32x128xf32>
    %8 = vector.broadcast %1 : vector<32x1xf32> to vector<32x128xf32>
    %9 = arith.addf %8, %7 : vector<32x128xf32>
    %10 = vector.extract_strided_slice %0 {offsets = [0, 1], sizes = [32, 1], strides = [1, 1]} : vector<32x2xf32> to vector<32x1xf32>
    %11 = vector.extract_strided_slice %2 {offsets = [1, 0], sizes = [1, 128], strides = [1, 1]} : vector<2x128xf32> to vector<1x128xf32>
    %12 = vector.broadcast %10 : vector<32x1xf32> to vector<32x128xf32>
    %13 = vector.broadcast %11 : vector<1x128xf32> to vector<32x128xf32>
    %14 = arith.mulf %12, %13 : vector<32x128xf32>
    %15 = arith.addf %9, %14 : vector<32x128xf32>
    %16 = math.tanh %15 : vector<32x128xf32>
    %c0_5 = arith.constant 0 : index
    %c0_6 = arith.constant 0 : index
    %c0_7 = arith.constant 0 : index
    %17 = vector.load %arg4[%c0_5, %c0_6, %c0_7] : memref<3x32x32xf32, #tpu.memory_space<vmem>>, vector<1x32x32xf32>
    %18 = vector.shape_cast %17 : vector<1x32x32xf32> to vector<32x32xf32>
    %c0_8 = arith.constant 0 : index
    %c0_9 = arith.constant 0 : index
    %c0_10 = arith.constant 0 : index
    %19 = vector.load %arg5[%c0_8, %c0_9, %c0_10] : memref<3x32x1xf32, #tpu.memory_space<vmem>>, vector<1x32x1xf32>
    %20 = vector.shape_cast %19 : vector<1x32x1xf32> to vector<32x1xf32>
    %cst = arith.constant dense<0.000000e+00> : vector<32x128xf32>
    %21 = tpu.matmul %18, %16, %cst {dimension_numbers = #tpu.dot_dimension_numbers<[1], [0], [0], [1], [0, 0, 1, 1], [], []>} : vector<32x32xf32>, vector<32x128xf32>, vector<32x128xf32> -> vector<32x128xf32>
    %22 = vector.broadcast %20 : vector<32x1xf32> to vector<32x128xf32>
    %23 = arith.addf %21, %22 : vector<32x128xf32>
    %24 = math.tanh %23 : vector<32x128xf32>
    %c1 = arith.constant 1 : index
    %c0_11 = arith.constant 0 : index
    %c0_12 = arith.constant 0 : index
    %25 = vector.load %arg4[%c1, %c0_11, %c0_12] : memref<3x32x32xf32, #tpu.memory_space<vmem>>, vector<1x32x32xf32>
    %26 = vector.shape_cast %25 : vector<1x32x32xf32> to vector<32x32xf32>
    %c1_13 = arith.constant 1 : index
    %c0_14 = arith.constant 0 : index
    %c0_15 = arith.constant 0 : index
    %27 = vector.load %arg5[%c1_13, %c0_14, %c0_15] : memref<3x32x1xf32, #tpu.memory_space<vmem>>, vector<1x32x1xf32>
    %28 = vector.shape_cast %27 : vector<1x32x1xf32> to vector<32x1xf32>
    %cst_16 = arith.constant dense<0.000000e+00> : vector<32x128xf32>
    %29 = tpu.matmul %26, %24, %cst_16 {dimension_numbers = #tpu.dot_dimension_numbers<[1], [0], [0], [1], [0, 0, 1, 1], [], []>} : vector<32x32xf32>, vector<32x128xf32>, vector<32x128xf32> -> vector<32x128xf32>
    %30 = vector.broadcast %28 : vector<32x1xf32> to vector<32x128xf32>
    %31 = arith.addf %29, %30 : vector<32x128xf32>
    %32 = math.tanh %31 : vector<32x128xf32>
    %c2 = arith.constant 2 : index
    %c0_17 = arith.constant 0 : index
    %c0_18 = arith.constant 0 : index
    %33 = vector.load %arg4[%c2, %c0_17, %c0_18] : memref<3x32x32xf32, #tpu.memory_space<vmem>>, vector<1x32x32xf32>
    %34 = vector.shape_cast %33 : vector<1x32x32xf32> to vector<32x32xf32>
    %c2_19 = arith.constant 2 : index
    %c0_20 = arith.constant 0 : index
    %c0_21 = arith.constant 0 : index
    %35 = vector.load %arg5[%c2_19, %c0_20, %c0_21] : memref<3x32x1xf32, #tpu.memory_space<vmem>>, vector<1x32x1xf32>
    %36 = vector.shape_cast %35 : vector<1x32x1xf32> to vector<32x1xf32>
    %cst_22 = arith.constant dense<0.000000e+00> : vector<32x128xf32>
    %37 = tpu.matmul %34, %32, %cst_22 {dimension_numbers = #tpu.dot_dimension_numbers<[1], [0], [0], [1], [0, 0, 1, 1], [], []>} : vector<32x32xf32>, vector<32x128xf32>, vector<32x128xf32> -> vector<32x128xf32>
    %38 = vector.broadcast %36 : vector<32x1xf32> to vector<32x128xf32>
    %39 = arith.addf %37, %38 : vector<32x128xf32>
    %40 = math.tanh %39 : vector<32x128xf32>
    %c0_23 = arith.constant 0 : index
    %c0_24 = arith.constant 0 : index
    %41 = vector.load %arg6[%c0_23, %c0_24] : memref<1x32xf32, #tpu.memory_space<vmem>>, vector<1x32xf32>
    %c0_25 = arith.constant 0 : index
    %c0_26 = arith.constant 0 : index
    %42 = vector.load %arg7[%c0_25, %c0_26] : memref<1x1xf32, #tpu.memory_space<vmem>>, vector<1x1xf32>
    %cst_27 = arith.constant dense<0.000000e+00> : vector<1x128xf32>
    %43 = tpu.matmul %41, %40, %cst_27 {dimension_numbers = #tpu.dot_dimension_numbers<[1], [0], [0], [1], [0, 0, 1, 1], [], []>} : vector<1x32xf32>, vector<32x128xf32>, vector<1x128xf32> -> vector<1x128xf32>
    %44 = vector.broadcast %42 : vector<1x1xf32> to vector<1x128xf32>
    %45 = arith.addf %43, %44 : vector<1x128xf32>
    %c0_28 = arith.constant 0 : index
    %c0_29 = arith.constant 0 : index
    %46 = vector.load %arg8[%c0_28, %c0_29] : memref<1x128xf32, #tpu.memory_space<vmem>>, vector<1x128xf32>
    tpu.vector_store %arg8[%c0_28, %c0_29], %45 {strides = array<i32>} : memref<1x128xf32, #tpu.memory_space<vmem>>, vector<1x128xf32>,
    return
  }
  func.func @transform_0(%arg0: i32) -> (i32, i32) {
    %c0_i32 = arith.constant 0 : i32
    %c0_i32_0 = arith.constant 0 : i32
    return %c0_i32, %arg0 : i32, i32
  }
  func.func @transform_1(%arg0: i32) -> (i32, i32) {
    %c0_i32 = arith.constant 0 : i32
    %c0_i32_0 = arith.constant 0 : i32
    %c0_i32_1 = arith.constant 0 : i32
    return %c0_i32, %c0_i32_0 : i32, i32
  }
  func.func @transform_2(%arg0: i32) -> (i32, i32) {
    %c0_i32 = arith.constant 0 : i32
    %c0_i32_0 = arith.constant 0 : i32
    %c0_i32_1 = arith.constant 0 : i32
    return %c0_i32, %c0_i32_0 : i32, i32
  }
  func.func @transform_3(%arg0: i32) -> (i32, i32, i32) {
    %c0_i32 = arith.constant 0 : i32
    %c0_i32_0 = arith.constant 0 : i32
    %c0_i32_1 = arith.constant 0 : i32
    %c0_i32_2 = arith.constant 0 : i32
    return %c0_i32, %c0_i32_0, %c0_i32_1 : i32, i32, i32
  }
  func.func @transform_4(%arg0: i32) -> (i32, i32, i32) {
    %c0_i32 = arith.constant 0 : i32
    %c0_i32_0 = arith.constant 0 : i32
    %c0_i32_1 = arith.constant 0 : i32
    %c0_i32_2 = arith.constant 0 : i32
    return %c0_i32, %c0_i32_0, %c0_i32_1 : i32, i32, i32
  }
  func.func @transform_5(%arg0: i32) -> (i32, i32) {
    %c0_i32 = arith.constant 0 : i32
    %c0_i32_0 = arith.constant 0 : i32
    %c0_i32_1 = arith.constant 0 : i32
    return %c0_i32, %c0_i32_0 : i32, i32
  }
  func.func @transform_6(%arg0: i32) -> (i32, i32) {
    %c0_i32 = arith.constant 0 : i32
    %c0_i32_0 = arith.constant 0 : i32
    %c0_i32_1 = arith.constant 0 : i32
    return %c0_i32, %c0_i32_0 : i32, i32
  }
  func.func @transform_7(%arg0: i32) -> (i32, i32) {
    %c0_i32 = arith.constant 0 : i32
    %c0_i32_0 = arith.constant 0 : i32
    return %c0_i32, %arg0 : i32, i32
  }
}

</mosaic_0001>

<bundles_post_ra>
// kernel: tpu_custom_call.1
= control target key start
LH: loop header
LB: loop body
LE: loop exit
PB: predicated region body
PF: predicated region fallthrough
CT: control target
= control target key end

     0   :  { %s651_s0 = inlined_call_operand.vmem [shape: f32[2,128], index: 0, kind: input, shape index: {}]   ;;  %s652_s1 = inlined_call_operand.vmem [shape: f32[32,2], index: 1, kind: input, shape index: {}]   ;;  %s653_s2 = inlined_call_operand.vmem [shape: f32[32,1], index: 2, kind: input, shape index: {}]   ;;  %s654_s3 = inlined_call_operand.vmem [shape: f32[3,32,32], index: 3, kind: input, shape index: {}]   ;;  %s655_s4 = inlined_call_operand.vmem [shape: f32[3,32,1], index: 4, kind: input, shape index: {}]   ;;  %s656_s5 = inlined_call_operand.vmem [shape: f32[1,32], index: 5, kind: input, shape index: {}]   ;;  %s657_s6 = inlined_call_operand.<no memory space> [shape: f32[1,1], index: 6, kind: input, shape index: {}]   ;;  %s658_s7 = inlined_call_operand.hbm [shape: f32[1,128], index: 7, kind: output, shape index: {}]  }
   0x1   :  { %v12_v0 = vstv %s657_s6 }
   0x2   :  { %13 = vst [vmem:[#allocation2] sm:$0x1] %v12_v0 }
   0x3   :  { %v36_v1 = vld [vmem:[%s653_s2 + $0x18] sm:$0xff]  ;;  %v30_v3 = vld [vmem:[%s652_s1 + $0x8] sm:$0xff]  ;;  %v487_v4 = vmov 0  }
   0x4   :  { %v32_v2 = vld [vmem:[%s652_s1 + $0x18] sm:$0xff]  ;;  %423 = vset.pattern.permute.xlu2 %v487_v4  ;;  %421 = vset.pattern.permute.xlu1 %v487_v4 }
   0x5   :  { %420 = vset.pattern.permute.xlu0 %v487_v4  ;;  %80 = vperm.xlu1 %421, %v36_v1  }
   0x6   :  { %55 = vperm.xlu0 %420, %v32_v2   ;;  %45 = vperm.xlu2 %423, %v30_v3  }
   0x7   :  { %14 = vsyncpa [#allocation4], 0  ;;  %v31_v5 = vld [vmem:[%s652_s1 + $0x10] sm:$0xff]  ;;  %v488_v7 = vmov 1   ;;  %v34_v8 = vld [vmem:[%s653_s2 + $0x8] sm:$0xff]  ;;  %vm144_vm0 = vcmask 261120  }
   0x8   :  { %v35_v6 = vld [vmem:[%s653_s2 + $0x10] sm:$0xff]  ;;  %v29_v9 = vld [vmem:[%s652_s1] sm:$0xff]  ;;  %v399_v12 = vld [vmem:[%s655_s4 + $0x38] sm:$0xff]  ;;  %s489_s14 = smov [#allocation3]   ;;  %s379_s18 = sshll.u32 %s658_s7, 4  ;;  %s380_s18 = int_to_ptr.hbm [resolvable:$true] %s379_s18 }
   0x9   :  { %v33_v10 = vld [vmem:[%s653_s2] sm:$0xff]  ;;  %v122_v11 = vld [vmem:[%s655_s4 + $0x10] sm:$0xff]  ;;  %v397_v13 = vld [vmem:[%s655_s4 + $0x28] sm:$0xff]  ;;  %s377_s15 = sshll.u32 %s489_s14, 4  ;;  %s378_s15 = int_to_ptr.vmem [resolvable:$true] %s377_s15 }
   0xa   :  { %v410_v14 = vld [vmem:[%s655_s4 + $0x50] sm:$0xff]  ;;  %v341_v15 = vld [vmem:[#allocation2] sm:$0x1]  ;;  %v123_v28 = vld [vmem:[%s655_s4 + $0x18] sm:$0xff] }
   0xb   :  { %v37_v17 = vld [vmem:[%s651_s0] sm:$0x3]  ;;  %v398_v43 = vld [vmem:[%s655_s4 + $0x30] sm:$0xff]  ;;  %v121_v44 = vld [vmem:[%s655_s4 + $0x8] sm:$0xff] }
   0xc   :  { %v58_v20 = vperm.slane %v37_v17, 0  ;;  %v103_v22 = vperm.slane %v37_v17, 1  ;;  %v120_v36 = vld [vmem:[%s655_s4] sm:$0xff]  ;;  %v411_v53 = vld [vmem:[%s655_s4 + $0x58] sm:$0xff]  ;;  %v409_v59 = vld [vmem:[%s655_s4 + $0x48] sm:$0xff] }
   0xd   :  { %422 = vset.pattern.permute.xlu1 %v488_v7  ;;  %v396_v54 = vld [vmem:[%s655_s4 + $0x20] sm:$0xff]  ;;  %v117_v60 = vld [vmem:[%s654_s3 + $0x8] sm:$0xff]  ;;  %v118_v61 = vld [vmem:[%s654_s3 + $0x10] sm:$0xff] }
   0xe   :  { %50 = vperm.xlu0 %420, %v31_v5   ;;  %75 = vperm.xlu2 %423, %v35_v6   ;;  %v116_v56 = vld [vmem:[%s654_s3] sm:$0xff]  ;;  %v119_v62 = vld [vmem:[%s654_s3 + $0x18] sm:$0xff]  ;;  %v394_v17 = vld [vmem:[%s654_s3 + $0x30] sm:$0xff] }
   0xf   :  { %100 = vperm.xlu1 %422, %v32_v2   ;;  %v408_v58 = vld [vmem:[%s655_s4 + $0x40] sm:$0xff] }
  0x16   :  { %424 = vset.pattern.permute.xlu0 %v488_v7  ;;  %70 = vperm.xlu2 %423, %v34_v8  }
  0x17   :  { %425 = vset.pattern.permute.xlu1 %v487_v4  ;;  %96 = vperm.xlu0 %424, %v31_v5  }
  0x18   :  { %40 = vperm.xlu1 %425, %v29_v9  }
  0x1e   :  { %65 = vperm.xlu2 %423, %v33_v10  }
  0x1f   :  { %88 = vperm.xlu0 %424, %v29_v9  }
  0x20   :  { %426 = vset.pattern.permute.xlu1 %v488_v7 }
  0x21   :  { %92 = vperm.xlu1 %426, %v30_v3  }
  0x26   :  { %136 = vperm.xlu2 %423, %v122_v11  }
  0x27   :  { %428 = vset.pattern.permute.xlu0 %v487_v4 }
  0x28   :  { %131 = vperm.xlu0 %428, %v121_v44  }
  0x29   :  { %427 = vset.pattern.permute.xlu1 %v487_v4 }
  0x2a   :  { %141 = vperm.xlu1 %427, %v123_v28  }
  0x2e   :  { %217 = vperm.xlu2 %423, %v399_v12  }
  0x30   :  { %202 = vperm.xlu0 %428, %v396_v54   ;;  %v340_v54 = vld [vmem:[%s656_s5] sm:$0x1] }
  0x32   :  { %126 = vperm.xlu1 %427, %v120_v36   ;;  %v405_v36 = vld [vmem:[%s654_s3 + $0x48] sm:$0xff] }
  0x36   :  { %207 = vperm.xlu2 %423, %v397_v13  }
  0x38   :  { %282 = vperm.xlu0 %428, %v409_v59  }
  0x3a   :  { %212 = vperm.xlu1 %427, %v398_v43  }
  0x3e   :  { %287 = vperm.xlu2 %423, %v410_v14   ;;  %v392_v14 = vld [vmem:[%s654_s3 + $0x20] sm:$0xff] }
  0x42   :  { %292 = vperm.xlu1 %427, %v411_v53  }
  0x46   :  { %344 = vperm.xlu2 %423, %v341_v15  }
  0x4a   :  { %277 = vperm.xlu1 %427, %v408_v58  }
  0x60   :  { %v46_v16 = vpop.permute.xlu2 %45 }
  0x61   :  { %v60_v39 = vmul.f32 %v58_v20, %v46_v16  ;;  %v393_v16 = vld [vmem:[%s654_s3 + $0x28] sm:$0xff] }
  0x68   :  { %v76_v23 = vpop.permute.xlu2 %75 }
  0x70   :  { %v71_v31 = vpop.permute.xlu2 %70 }
  0x71   :  { %v84_v48 = vadd.f32 %v71_v31, %v60_v39 }
  0x77   :  { %v81_v18 = vpop.permute.xlu1 %80 }
  0x78   :  { %v56_v19 = vpop.permute.xlu0 %55  ;;  %v66_v45 = vpop.permute.xlu2 %65 }
  0x79   :  { %v62_v21 = vmul.f32 %v58_v20, %v56_v19 }
  0x7b   :  { %v86_v26 = vadd.f32 %v81_v18, %v62_v21  ;;  %v395_v18 = vld [vmem:[%s654_s3 + $0x38] sm:$0xff] }
  0x80   :  { %v51_v24 = vpop.permute.xlu0 %50  ;;  %v137_v3 = vpop.permute.xlu2 %136 }
  0x81   :  { %v101_v25 = vpop.permute.xlu1 %100  ;;  %v61_v30 = vmul.f32 %v58_v20, %v51_v24 }
  0x82   :  { %v107_v27 = vmul.f32 %v103_v22, %v101_v25 }
  0x83   :  { %v85_v33 = vadd.f32 %v76_v23, %v61_v30 }
  0x84   :  { %v111_v29 = vadd.f32 %v107_v27, %v86_v26 }
  0x86   :  { %429 = vtanh.f32 %v111_v29 }
  0x88   :  { %v218_v21 = vpop.permute.xlu2 %217 }
  0x89   :  { %v97_v32 = vpop.permute.xlu0 %96 }
  0x8a   :  { %v106_v34 = vmul.f32 %v103_v22, %v97_v32  ;;  %v41_v35 = vpop.permute.xlu1 %40 }
  0x8b   :  { %v59_v40 = vmul.f32 %v58_v20, %v41_v35 }
  0x8c   :  { %v430_v37 = vpop.eup %429  ;;  %v110_v38 = vadd.f32 %v106_v34, %v85_v33  ;;  %v404_v34 = vld [vmem:[%s654_s3 + $0x40] sm:$0xff] }
  0x8d   :  { %169 = vmatpush.msra.mxu0 %v430_v37  ;;  %v83_v49 = vadd.f32 %v66_v45, %v59_v40  ;;  %v406_v37 = vld [vmem:[%s654_s3 + $0x50] sm:$0xff] }
  0x8e   :  { %431 = vtanh.f32 %v110_v38  ;;  %v407_v38 = vld [vmem:[%s654_s3 + $0x58] sm:$0xff] }
  0x90   :  { %v208_v27 = vpop.permute.xlu2 %207 }
  0x91   :  { %v89_v41 = vpop.permute.xlu0 %88 }
  0x92   :  { %v104_v42 = vmul.f32 %v103_v22, %v89_v41 }
  0x93   :  { %v93_v46 = vpop.permute.xlu1 %92 }
  0x94   :  { %v432_v47 = vpop.eup %431  ;;  %v105_v50 = vmul.f32 %v103_v22, %v93_v46  ;;  %v108_v51 = vadd.f32 %v104_v42, %v83_v49 }
  0x95   :  { %170 = vmatpush.msra.mxu0 %v432_v47 }
  0x96   :  { %v109_v52 = vadd.f32 %v105_v50, %v84_v48 }
  0x98   :  { %433 = vtanh.f32 %v109_v52  ;;  %v288_v43 = vpop.permute.xlu2 %287 }
  0x99   :  { %435 = vtanh.f32 %v108_v51 }
  0x9a   :  { %v132_v4 = vpop.permute.xlu0 %131 }
  0x9c   :  { %v142_v2 = vpop.permute.xlu1 %141 }
  0x9e   :  { %v434_v55 = vpop.eup %433 }
  0x9f   :  { %171 = vmatpush.msra.mxu0 %v434_v55  ;;  %v436_v57 = vpop.eup %435 }
  0xa1   :  { %172 = vmatpush.msra.mxu0 %v436_v57 }
  0xa2   :  { %388 = vmatmul.msk.f32.vlgmr.msra.gmra.mxu0 %vm144_vm0, %v116_v56  ;;  %v203_v29 = vpop.permute.xlu0 %202  ;;  %v345_v56 = vpop.permute.xlu2 %344 }
  0xa3   :  { %v347_v57 = vperm.slane %v345_v56, 0 }
  0xa4   :  { %v127_v9 = vpop.permute.xlu1 %126 }
  0xaa   :  { %389 = vmatmul.msk.f32.gmra.mxu0 %vm144_vm0, %v117_v60  ;;  %v283_v47 = vpop.permute.xlu0 %282 }
  0xac   :  { %v213_v23 = vpop.permute.xlu1 %212 }
  0xb2   :  { %390 = vmatmul.msk.f32.gmra.mxu0 %vm144_vm0, %v118_v61 }
  0xb4   :  { %v293_v42 = vpop.permute.xlu1 %292 }
  0xba   :  { %391 = vmatmul.msk.f32.gmra.mxu0 %vm144_vm0, %v119_v62 }
  0xbc   :  { %v278_v49 = vpop.permute.xlu1 %277 }
 0x11f   :  { %v174_v63 = vpop.f32.mrf.mxu0 }
 0x120   :  { %v175_v10 = vadd.f32 %v174_v63, %v127_v9 }
 0x127   :  { %v177_v0 = vpop.f32.mrf.mxu0 }
 0x128   :  { %v178_v8 = vadd.f32 %v177_v0, %v132_v4 }
 0x12f   :  { %v180_v1 = vpop.f32.mrf.mxu0 }
 0x130   :  { %v181_v6 = vadd.f32 %v180_v1, %v137_v3 }
 0x137   :  { %v183_v5 = vpop.f32.mrf.mxu0 }
 0x138   :  { %v184_v7 = vadd.f32 %v183_v5, %v142_v2 }
 0x13a   :  { %437 = vtanh.f32 %v184_v7 }
 0x13b   :  { %439 = vtanh.f32 %v181_v6 }
 0x13c   :  { %441 = vtanh.f32 %v178_v8 }
 0x13d   :  { %443 = vtanh.f32 %v175_v10 }
 0x140   :  { %v438_v11 = vpop.eup %437 }
 0x141   :  { %244 = vmatpush.msra.mxu1 %v438_v11  ;;  %v440_v12 = vpop.eup %439 }
 0x142   :  { %v442_v13 = vpop.eup %441 }
 0x143   :  { %245 = vmatpush.msra.mxu1 %v440_v12  ;;  %v444_v15 = vpop.eup %443 }
 0x145   :  { %246 = vmatpush.msra.mxu1 %v442_v13 }
 0x147   :  { %247 = vmatpush.msra.mxu1 %v444_v15 }
 0x148   :  { %400 = vmatmul.msk.f32.vlgmr.msra.gmra.mxu1 %vm144_vm0, %v392_v14 }
 0x150   :  { %401 = vmatmul.msk.f32.gmra.mxu1 %vm144_vm0, %v393_v16 }
 0x158   :  { %402 = vmatmul.msk.f32.gmra.mxu1 %vm144_vm0, %v394_v17 }
 0x160   :  { %403 = vmatmul.msk.f32.gmra.mxu1 %vm144_vm0, %v395_v18 }
 0x1c5   :  { %v249_v19 = vpop.f32.mrf.mxu1 }
 0x1c6   :  { %v250_v30 = vadd.f32 %v249_v19, %v203_v29 }
 0x1cd   :  { %v252_v20 = vpop.f32.mrf.mxu1 }
 0x1ce   :  { %v253_v28 = vadd.f32 %v252_v20, %v208_v27 }
 0x1d5   :  { %v255_v22 = vpop.f32.mrf.mxu1 }
 0x1d6   :  { %v256_v25 = vadd.f32 %v255_v22, %v213_v23 }
 0x1dd   :  { %v258_v24 = vpop.f32.mrf.mxu1 }
 0x1de   :  { %v259_v26 = vadd.f32 %v258_v24, %v218_v21 }
 0x1e0   :  { %445 = vtanh.f32 %v259_v26 }
 0x1e1   :  { %447 = vtanh.f32 %v256_v25 }
 0x1e2   :  { %449 = vtanh.f32 %v253_v28 }
 0x1e3   :  { %451 = vtanh.f32 %v250_v30 }
 0x1e6   :  { %v446_v31 = vpop.eup %445 }
 0x1e7   :  { %319 = vmatpush.msra.mxu2 %v446_v31  ;;  %v448_v32 = vpop.eup %447 }
 0x1e8   :  { %v450_v33 = vpop.eup %449 }
 0x1e9   :  { %320 = vmatpush.msra.mxu2 %v448_v32  ;;  %v452_v35 = vpop.eup %451 }
 0x1eb   :  { %321 = vmatpush.msra.mxu2 %v450_v33 }
 0x1ed   :  { %322 = vmatpush.msra.mxu2 %v452_v35 }
 0x1ee   :  { %412 = vmatmul.msk.f32.vlgmr.msra.gmra.mxu2 %vm144_vm0, %v404_v34 }
 0x1f6   :  { %413 = vmatmul.msk.f32.gmra.mxu2 %vm144_vm0, %v405_v36 }
 0x1fe   :  { %414 = vmatmul.msk.f32.gmra.mxu2 %vm144_vm0, %v406_v37 }
 0x206   :  { %415 = vmatmul.msk.f32.gmra.mxu2 %vm144_vm0, %v407_v38 }
 0x271   :  { %v324_v39 = vpop.f32.mrf.mxu2 }
 0x272   :  { %v325_v50 = vadd.f32 %v324_v39, %v278_v49 }
 0x279   :  { %v327_v40 = vpop.f32.mrf.mxu2 }
 0x27a   :  { %v328_v48 = vadd.f32 %v327_v40, %v283_v47 }
 0x281   :  { %v330_v41 = vpop.f32.mrf.mxu2 }
 0x282   :  { %v331_v45 = vadd.f32 %v330_v41, %v288_v43 }
 0x289   :  { %v333_v44 = vpop.f32.mrf.mxu2 }
 0x28a   :  { %v334_v46 = vadd.f32 %v333_v44, %v293_v42 }
 0x28c   :  { %453 = vtanh.f32 %v334_v46 }
 0x28d   :  { %455 = vtanh.f32 %v331_v45 }
 0x28e   :  { %457 = vtanh.f32 %v328_v48 }
 0x28f   :  { %459 = vtanh.f32 %v325_v50 }
 0x292   :  { %v454_v51 = vpop.eup %453 }
 0x293   :  { %363 = vmatpush.msra.mxu3 %v454_v51  ;;  %v456_v52 = vpop.eup %455 }
 0x294   :  { %v458_v53 = vpop.eup %457 }
 0x295   :  { %364 = vmatpush.msra.mxu3 %v456_v52  ;;  %v460_v55 = vpop.eup %459 }
 0x297   :  { %365 = vmatpush.msra.mxu3 %v458_v53 }
 0x299   :  { %366 = vmatpush.msra.mxu3 %v460_v55 }
 0x29a   :  { %416 = vmatmul.msk.f32.vlgmr.msra.gmra.mxu3 %vm144_vm0, %v340_v54 }
 0x31d   :  { %v368_v58 = vpop.f32.mrf.mxu3 }
 0x31e   :  { %v369_v59 = vadd.f32 %v368_v58, %v347_v57 }
 0x320   :  { %371 = vst [vmem:[#allocation3] sm:$0x1] %v369_v59 }
 0x321   :  { %382 = dma.vmem_to_hbm [thread:$0]  %s378_s15, 16, %s380_s18, [#allocation4]  }
 0x322   :  { %485 = dma.done.wait [#allocation4], 16  }
 0x323   :  { %486 = vsyncadd [#allocation4], 4294967280 }
 0x324   :  { %387 = vsyncpa [#allocation4], 1 }

</bundles_post_ra>
